<compile_context>
chip_gen: v5e
topology: v5e:2x2
jax: 0.10.0
libtpu: 0.0.40
codegen_flags: <defaults>
</compile_context>

<pallas_src>
import functools

import jax
import jax.numpy as jnp
from jax import lax
from jax.experimental import pallas as pl
from jax.experimental.pallas import tpu as pltpu


def _round_up(v, m):
    return (v + m - 1) // m * m


def _corr_kernel(x_ref, w_ref, o_ref, patch_ref, *, taps, C_pad, Nout, bb):
    """One grid step processes bb batch elements.

    x_ref:     (bb, NPH, C_pad, L)  phase-decomposed, spatially-flattened input
    w_ref:     (bb, OC, K)          im2col weights, K = kh*kw*C_pad
    o_ref:     (bb, OC, Nout)       lane-dense flattened output
    patch_ref: (K, Nout) VMEM scratch (im2col patch matrix)
    taps:      static list of (phase_index, flat_offset), one per tap, in the
               same order as the im2col weight layout (t = p*kw + q).
    """
    for ib in range(bb):                      # bb is small -> static unroll
        # --- build the im2col patch matrix in the VMEM scratch -----------
        for t, (ph, off) in enumerate(taps):
            # Contiguous 2D slab copy: no reshape, no strided value slice.
            # t*C_pad is a multiple of 8 -> sublane-aligned scratch write.
            patch_ref[t * C_pad:(t + 1) * C_pad, :] = (
                x_ref[ib, ph, :, pl.ds(off, Nout)])

        # --- single deep-K MXU matmul: (OC, K) @ (K, Nout) ---------------
        acc = jnp.dot(w_ref[ib], patch_ref[...],
                      preferred_element_type=jnp.float32)
        o_ref[ib] = acc.astype(o_ref.dtype)
        # TODO(synk): for tiny OC production configs (OC=3) a VPU
        # broadcast-MAC path would beat the MXU (occupancy ~2%); kept on the
        # MXU for generality.


def correlation(x, kernel, stride, padding, *, use_bf16=False,
                batch_block=None):
    """Equivalent of Correlation.forward(x, kernel, stride, padding).

    x:      (B, C, H, W)        NCHW, like the PyTorch module
    kernel: (B, OC*C, kh, kw)   per-batch filters (torch .view semantics)
    returns (B, OC, Ho, Wo)
    """
    B, C, H, W = x.shape
    kb, KC, kh, kw = kernel.shape
    assert kb == B and KC % C == 0
    OC = KC // C
    s = int(stride)
    Ho = (H + 2 * padding - kh) // s + 1
    Wo = (W + 2 * padding - kw) // s + 1
    assert Ho > 0 and Wo > 0
    C_pad = _round_up(C, 8)                  # sublane-aligned channel block
    K = kh * kw * C_pad

    if batch_block is None:
        batch_block = next(c for c in (8, 4, 2, 1) if B % c == 0)
    bb = batch_block
    assert B % bb == 0

    compute_dtype = jnp.bfloat16 if use_bf16 else x.dtype

    # --- wrapper-side layout plumbing (XLA, no conv compute) -------------
    # Zero-pad channels (sublane alignment) and spatial (conv padding).
    x_p = jnp.pad(x, ((0, 0), (0, C_pad - C),
                      (padding, padding), (padding, padding)))
    x_p = x_p.astype(compute_dtype)
    Hp0, Wp0 = x_p.shape[2], x_p.shape[3]

    # Space-to-phase: phase (rp, rq) = x_p[:, :, rp::s, rq::s].  Every conv
    # tap then reads a contiguous window from exactly one phase, so the kernel
    # never needs strided slicing, even for stride > 1.
    Hph = -(-Hp0 // s)
    Wph = -(-Wp0 // s)
    phases = []
    for rp in range(s):
        for rq in range(s):
            ph = x_p[:, :, rp::s, rq::s]
            ph = jnp.pad(ph, ((0, 0), (0, 0),
                              (0, Hph - ph.shape[2]),
                              (0, Wph - ph.shape[3])))
            phases.append(ph)
    NPH = s * s
    x_ph = jnp.stack(phases, axis=1)              # (B, NPH, C_pad, Hph, Wph)
    L = Hph * Wph
    x_flat = x_ph.reshape(B, NPH, C_pad, L)       # lane-dense flattened spatial

    # Static tap table: (phase index, flat offset) for tap t = p*kw + q.
    taps = []
    for p in range(kh):
        for q in range(kw):
            taps.append(((p % s) * s + (q % s), (p // s) * Wph + (q // s)))
    # Flattened output span: row-major with stride Wph between output rows;
    # the (Wph - Wo) wrap columns per row are garbage and dropped afterwards.
    Nout = (Ho - 1) * Wph + Wo

    # im2col weights: tap-major, channel-minor (matches patch row ordering).
    w = kernel.reshape(B, OC, C, kh, kw)
    w = jnp.transpose(w, (0, 1, 3, 4, 2))                  # (B, OC, kh, kw, C)
    w = jnp.pad(w, ((0, 0), (0, 0), (0, 0), (0, 0), (0, C_pad - C)))
    w = w.reshape(B, OC, K).astype(compute_dtype)

    # VMEM budget estimate: double-buffered inputs/outputs + scratch.
    in_itemsize = 2 if use_bf16 else x.dtype.itemsize
    out_itemsize = x.dtype.itemsize
    vmem_bytes = (2 * bb * (NPH * C_pad * L + OC * K) * in_itemsize
                  + 2 * bb * OC * Nout * out_itemsize
                  + K * Nout * in_itemsize)
    vmem_limit = None
    if vmem_bytes > 32 * 1024 * 1024:
        vmem_limit = min(int(vmem_bytes * 5 // 4), 112 * 1024 * 1024)
    # TODO(synk): for large production spatial sizes, add a second "parallel"
    # grid axis tiling output rows (with a (kh-1)//s-row halo) instead of
    # whole-image per-batch blocks.

    body = functools.partial(_corr_kernel, taps=taps, C_pad=C_pad,
                             Nout=Nout, bb=bb)

    out_flat = pl.pallas_call(
        body,
        out_shape=jax.ShapeDtypeStruct((B, OC, Nout), x.dtype),
        grid=(B // bb,),
        in_specs=[
            pl.BlockSpec((bb, NPH, C_pad, L), lambda b: (b, 0, 0, 0)),
            pl.BlockSpec((bb, OC, K), lambda b: (b, 0, 0)),
        ],
        out_specs=pl.BlockSpec((bb, OC, Nout), lambda b: (b, 0, 0)),
        scratch_shapes=[pltpu.VMEM((K, Nout), compute_dtype)],
        compiler_params=pltpu.CompilerParams(
            dimension_semantics=("parallel",),
            vmem_limit_bytes=vmem_limit,
        ),
    )(x_flat, w)

    # Un-flatten the lane-dense spatial axis outside the kernel and drop the
    # per-row wrap columns.
    out_pad = jnp.pad(out_flat, ((0, 0), (0, 0), (0, Ho * Wph - Nout)))
    return out_pad.reshape(B, OC, Ho, Wph)[..., :Wo]


def correlation_ref(x, kernel, stride, padding):
    """Pure-JAX reference mirroring xcorr_slow (per-batch F.conv2d)."""
    B, C, H, W = x.shape
    _, KC, kh, kw = kernel.shape
    OC = KC // C
    w = kernel.reshape(B, OC, C, kh, kw)
    outs = []
    for b in range(B):
        o = lax.conv_general_dilated(
            x[b:b + 1], w[b],
            window_strides=(stride, stride),
            padding=[(padding, padding), (padding, padding)],
            dimension_numbers=("NCHW", "OIHW", "NCHW"))
        outs.append(o)
    return jnp.concatenate(outs, axis=0)


if __name__ == "__main__":
    key = jax.random.PRNGKey(0)
    kx, kk = jax.random.split(key)

    B, C, H, W = 2, 4, 16, 16
    OC, kh, kw = 3, 3, 3
    x = jax.random.normal(kx, (B, C, H, W), dtype=jnp.float32)
    kernel = jax.random.normal(kk, (B, OC * C, kh, kw), dtype=jnp.float32)

    ok = True
    # Exact (f32) path — must match the conv reference tightly.
    for stride, padding in [(1, 1), (2, 1), (1, 0)]:
        out = jax.block_until_ready(correlation(x, kernel, stride, padding))
        ref = correlation_ref(x, kernel, stride, padding)
        if out.shape != ref.shape or not jnp.allclose(out, ref,
                                                      atol=1e-4, rtol=1e-4):
            ok = False
            print(f"MISMATCH f32 stride={stride} padding={padding} "
                  f"max_err={float(jnp.max(jnp.abs(out - ref)))}")

    # batch_block=1 variant (exercises the per-element grid path).
    out_bb1 = jax.block_until_ready(correlation(x, kernel, 1, 1, batch_block=1))
    ref = correlation_ref(x, kernel, 1, 1)
    if out_bb1.shape != ref.shape or not jnp.allclose(out_bb1, ref,
                                                      atol=1e-4, rtol=1e-4):
        ok = False
        print(f"MISMATCH bb=1 max_err={float(jnp.max(jnp.abs(out_bb1 - ref)))}")

    # bf16 MXU-input path (v6e/v7x fast path) — loose tolerance, f32 accum.
    out_bf = jax.block_until_ready(correlation(x, kernel, 1, 1, use_bf16=True))
    if out_bf.shape != ref.shape or not jnp.allclose(out_bf, ref,
                                                     atol=2.5e-1, rtol=5e-2):
        ok = False
        print(f"MISMATCH bf16 max_err={float(jnp.max(jnp.abs(out_bf - ref)))}")

    if not ok:
        raise SystemExit(1)
    print("KERNEL_OK")
</pallas_src>

<mosaic_0001>
module attributes {stable_mosaic.version = 11 : i64} {
  func.func @_corr_kernel(%arg0: i32, %arg1: memref<2x1x8x324xf32, #tpu.memory_space<vmem>>, %arg2: memref<2x3x72xf32, #tpu.memory_space<vmem>>, %arg3: memref<2x3x286xf32, #tpu.memory_space<vmem>>, %arg4: memref<72x286xf32, #tpu.memory_space<vmem>>) attributes {dimension_semantics = [#tpu.dimension_semantics<parallel>], iteration_bounds = array<i64: 1>, scalar_prefetch = 0 : i64, scratch_operands = 1 : i64, tpu.core_type = #tpu.core_type<tc>, window_params = [{transform_indices = @transform_0, window_bounds = array<i64: 2, 1, 8, 324>}, {transform_indices = @transform_1, window_bounds = array<i64: 2, 3, 72>}, {transform_indices = @transform_2, window_bounds = array<i64: 2, 3, 286>}]} {
    %c0 = arith.constant 0 : index
    %c0_0 = arith.constant 0 : index
    %c0_1 = arith.constant 0 : index
    %c0_2 = arith.constant 0 : index
    %0 = vector.load %arg1[%c0, %c0_0, %c0_1, %c0_2] : memref<2x1x8x324xf32, #tpu.memory_space<vmem>>, vector<1x1x8x286xf32>
    %1 = vector.shape_cast %0 : vector<1x1x8x286xf32> to vector<8x286xf32>
    %c0_3 = arith.constant 0 : index
    %c0_4 = arith.constant 0 : index
    %2 = vector.load %arg4[%c0_3, %c0_4] : memref<72x286xf32, #tpu.memory_space<vmem>>, vector<8x286xf32>
    tpu.vector_store %arg4[%c0_3, %c0_4], %1 {strides = array<i32>} : memref<72x286xf32, #tpu.memory_space<vmem>>, vector<8x286xf32>,
    %c0_5 = arith.constant 0 : index
    %c0_6 = arith.constant 0 : index
    %c0_7 = arith.constant 0 : index
    %c1 = arith.constant 1 : index
    %3 = vector.load %arg1[%c0_5, %c0_6, %c0_7, %c1] : memref<2x1x8x324xf32, #tpu.memory_space<vmem>>, vector<1x1x8x286xf32>
    %4 = vector.shape_cast %3 : vector<1x1x8x286xf32> to vector<8x286xf32>
    %c8 = arith.constant 8 : index
    %c0_8 = arith.constant 0 : index
    %5 = vector.load %arg4[%c8, %c0_8] : memref<72x286xf32, #tpu.memory_space<vmem>>, vector<8x286xf32>
    tpu.vector_store %arg4[%c8, %c0_8], %4 {strides = array<i32>} : memref<72x286xf32, #tpu.memory_space<vmem>>, vector<8x286xf32>,
    %c0_9 = arith.constant 0 : index
    %c0_10 = arith.constant 0 : index
    %c0_11 = arith.constant 0 : index
    %c2 = arith.constant 2 : index
    %6 = vector.load %arg1[%c0_9, %c0_10, %c0_11, %c2] : memref<2x1x8x324xf32, #tpu.memory_space<vmem>>, vector<1x1x8x286xf32>
    %7 = vector.shape_cast %6 : vector<1x1x8x286xf32> to vector<8x286xf32>
    %c16 = arith.constant 16 : index
    %c0_12 = arith.constant 0 : index
    %8 = vector.load %arg4[%c16, %c0_12] : memref<72x286xf32, #tpu.memory_space<vmem>>, vector<8x286xf32>
    tpu.vector_store %arg4[%c16, %c0_12], %7 {strides = array<i32>} : memref<72x286xf32, #tpu.memory_space<vmem>>, vector<8x286xf32>,
    %c0_13 = arith.constant 0 : index
    %c0_14 = arith.constant 0 : index
    %c0_15 = arith.constant 0 : index
    %c18 = arith.constant 18 : index
    %9 = vector.load %arg1[%c0_13, %c0_14, %c0_15, %c18] : memref<2x1x8x324xf32, #tpu.memory_space<vmem>>, vector<1x1x8x286xf32>
    %10 = vector.shape_cast %9 : vector<1x1x8x286xf32> to vector<8x286xf32>
    %c24 = arith.constant 24 : index
    %c0_16 = arith.constant 0 : index
    %11 = vector.load %arg4[%c24, %c0_16] : memref<72x286xf32, #tpu.memory_space<vmem>>, vector<8x286xf32>
    tpu.vector_store %arg4[%c24, %c0_16], %10 {strides = array<i32>} : memref<72x286xf32, #tpu.memory_space<vmem>>, vector<8x286xf32>,
    %c0_17 = arith.constant 0 : index
    %c0_18 = arith.constant 0 : index
    %c0_19 = arith.constant 0 : index
    %c19 = arith.constant 19 : index
    %12 = vector.load %arg1[%c0_17, %c0_18, %c0_19, %c19] : memref<2x1x8x324xf32, #tpu.memory_space<vmem>>, vector<1x1x8x286xf32>
    %13 = vector.shape_cast %12 : vector<1x1x8x286xf32> to vector<8x286xf32>
    %c32 = arith.constant 32 : index
    %c0_20 = arith.constant 0 : index
    %14 = vector.load %arg4[%c32, %c0_20] : memref<72x286xf32, #tpu.memory_space<vmem>>, vector<8x286xf32>
    tpu.vector_store %arg4[%c32, %c0_20], %13 {strides = array<i32>} : memref<72x286xf32, #tpu.memory_space<vmem>>, vector<8x286xf32>,
    %c0_21 = arith.constant 0 : index
    %c0_22 = arith.constant 0 : index
    %c0_23 = arith.constant 0 : index
    %c20 = arith.constant 20 : index
    %15 = vector.load %arg1[%c0_21, %c0_22, %c0_23, %c20] : memref<2x1x8x324xf32, #tpu.memory_space<vmem>>, vector<1x1x8x286xf32>
    %16 = vector.shape_cast %15 : vector<1x1x8x286xf32> to vector<8x286xf32>
    %c40 = arith.constant 40 : index
    %c0_24 = arith.constant 0 : index
    %17 = vector.load %arg4[%c40, %c0_24] : memref<72x286xf32, #tpu.memory_space<vmem>>, vector<8x286xf32>
    tpu.vector_store %arg4[%c40, %c0_24], %16 {strides = array<i32>} : memref<72x286xf32, #tpu.memory_space<vmem>>, vector<8x286xf32>,
    %c0_25 = arith.constant 0 : index
    %c0_26 = arith.constant 0 : index
    %c0_27 = arith.constant 0 : index
    %c36 = arith.constant 36 : index
    %18 = vector.load %arg1[%c0_25, %c0_26, %c0_27, %c36] : memref<2x1x8x324xf32, #tpu.memory_space<vmem>>, vector<1x1x8x286xf32>
    %19 = vector.shape_cast %18 : vector<1x1x8x286xf32> to vector<8x286xf32>
    %c48 = arith.constant 48 : index
    %c0_28 = arith.constant 0 : index
    %20 = vector.load %arg4[%c48, %c0_28] : memref<72x286xf32, #tpu.memory_space<vmem>>, vector<8x286xf32>
    tpu.vector_store %arg4[%c48, %c0_28], %19 {strides = array<i32>} : memref<72x286xf32, #tpu.memory_space<vmem>>, vector<8x286xf32>,
    %c0_29 = arith.constant 0 : index
    %c0_30 = arith.constant 0 : index
    %c0_31 = arith.constant 0 : index
    %c37 = arith.constant 37 : index
    %21 = vector.load %arg1[%c0_29, %c0_30, %c0_31, %c37] : memref<2x1x8x324xf32, #tpu.memory_space<vmem>>, vector<1x1x8x286xf32>
    %22 = vector.shape_cast %21 : vector<1x1x8x286xf32> to vector<8x286xf32>
    %c56 = arith.constant 56 : index
    %c0_32 = arith.constant 0 : index
    %23 = vector.load %arg4[%c56, %c0_32] : memref<72x286xf32, #tpu.memory_space<vmem>>, vector<8x286xf32>
    tpu.vector_store %arg4[%c56, %c0_32], %22 {strides = array<i32>} : memref<72x286xf32, #tpu.memory_space<vmem>>, vector<8x286xf32>,
    %c0_33 = arith.constant 0 : index
    %c0_34 = arith.constant 0 : index
    %c0_35 = arith.constant 0 : index
    %c38 = arith.constant 38 : index
    %24 = vector.load %arg1[%c0_33, %c0_34, %c0_35, %c38] : memref<2x1x8x324xf32, #tpu.memory_space<vmem>>, vector<1x1x8x286xf32>
    %25 = vector.shape_cast %24 : vector<1x1x8x286xf32> to vector<8x286xf32>
    %c64 = arith.constant 64 : index
    %c0_36 = arith.constant 0 : index
    %26 = vector.load %arg4[%c64, %c0_36] : memref<72x286xf32, #tpu.memory_space<vmem>>, vector<8x286xf32>
    tpu.vector_store %arg4[%c64, %c0_36], %25 {strides = array<i32>} : memref<72x286xf32, #tpu.memory_space<vmem>>, vector<8x286xf32>,
    %c0_37 = arith.constant 0 : index
    %c0_38 = arith.constant 0 : index
    %c0_39 = arith.constant 0 : index
    %27 = vector.load %arg2[%c0_37, %c0_38, %c0_39] : memref<2x3x72xf32, #tpu.memory_space<vmem>>, vector<1x3x72xf32>
    %28 = vector.shape_cast %27 : vector<1x3x72xf32> to vector<3x72xf32>
    %c0_40 = arith.constant 0 : index
    %c0_41 = arith.constant 0 : index
    %29 = vector.load %arg4[%c0_40, %c0_41] : memref<72x286xf32, #tpu.memory_space<vmem>>, vector<72x286xf32>
    %cst = arith.constant dense<0.000000e+00> : vector<3x286xf32>
    %30 = tpu.matmul %28, %29, %cst {dimension_numbers = #tpu.dot_dimension_numbers<[1], [0], [0], [1], [0, 0, 1, 1], [], []>} : vector<3x72xf32>, vector<72x286xf32>, vector<3x286xf32> -> vector<3x286xf32>
    %c0_42 = arith.constant 0 : index
    %c0_43 = arith.constant 0 : index
    %c0_44 = arith.constant 0 : index
    %31 = vector.load %arg3[%c0_42, %c0_43, %c0_44] : memref<2x3x286xf32, #tpu.memory_space<vmem>>, vector<1x3x286xf32>
    %32 = vector.shape_cast %31 : vector<1x3x286xf32> to vector<3x286xf32>
    %33 = vector.shape_cast %30 : vector<3x286xf32> to vector<1x3x286xf32>
    tpu.vector_store %arg3[%c0_42, %c0_43, %c0_44], %33 {strides = array<i32>} : memref<2x3x286xf32, #tpu.memory_space<vmem>>, vector<1x3x286xf32>,
    %c1_45 = arith.constant 1 : index
    %c0_46 = arith.constant 0 : index
    %c0_47 = arith.constant 0 : index
    %c0_48 = arith.constant 0 : index
    %34 = vector.load %arg1[%c1_45, %c0_46, %c0_47, %c0_48] : memref<2x1x8x324xf32, #tpu.memory_space<vmem>>, vector<1x1x8x286xf32>
    %35 = vector.shape_cast %34 : vector<1x1x8x286xf32> to vector<8x286xf32>
    %c0_49 = arith.constant 0 : index
    %c0_50 = arith.constant 0 : index
    %36 = vector.load %arg4[%c0_49, %c0_50] : memref<72x286xf32, #tpu.memory_space<vmem>>, vector<8x286xf32>
    tpu.vector_store %arg4[%c0_49, %c0_50], %35 {strides = array<i32>} : memref<72x286xf32, #tpu.memory_space<vmem>>, vector<8x286xf32>,
    %c1_51 = arith.constant 1 : index
    %c0_52 = arith.constant 0 : index
    %c0_53 = arith.constant 0 : index
    %c1_54 = arith.constant 1 : index
    %37 = vector.load %arg1[%c1_51, %c0_52, %c0_53, %c1_54] : memref<2x1x8x324xf32, #tpu.memory_space<vmem>>, vector<1x1x8x286xf32>
    %38 = vector.shape_cast %37 : vector<1x1x8x286xf32> to vector<8x286xf32>
    %c8_55 = arith.constant 8 : index
    %c0_56 = arith.constant 0 : index
    %39 = vector.load %arg4[%c8_55, %c0_56] : memref<72x286xf32, #tpu.memory_space<vmem>>, vector<8x286xf32>
    tpu.vector_store %arg4[%c8_55, %c0_56], %38 {strides = array<i32>} : memref<72x286xf32, #tpu.memory_space<vmem>>, vector<8x286xf32>,
    %c1_57 = arith.constant 1 : index
    %c0_58 = arith.constant 0 : index
    %c0_59 = arith.constant 0 : index
    %c2_60 = arith.constant 2 : index
    %40 = vector.load %arg1[%c1_57, %c0_58, %c0_59, %c2_60] : memref<2x1x8x324xf32, #tpu.memory_space<vmem>>, vector<1x1x8x286xf32>
    %41 = vector.shape_cast %40 : vector<1x1x8x286xf32> to vector<8x286xf32>
    %c16_61 = arith.constant 16 : index
    %c0_62 = arith.constant 0 : index
    %42 = vector.load %arg4[%c16_61, %c0_62] : memref<72x286xf32, #tpu.memory_space<vmem>>, vector<8x286xf32>
    tpu.vector_store %arg4[%c16_61, %c0_62], %41 {strides = array<i32>} : memref<72x286xf32, #tpu.memory_space<vmem>>, vector<8x286xf32>,
    %c1_63 = arith.constant 1 : index
    %c0_64 = arith.constant 0 : index
    %c0_65 = arith.constant 0 : index
    %c18_66 = arith.constant 18 : index
    %43 = vector.load %arg1[%c1_63, %c0_64, %c0_65, %c18_66] : memref<2x1x8x324xf32, #tpu.memory_space<vmem>>, vector<1x1x8x286xf32>
    %44 = vector.shape_cast %43 : vector<1x1x8x286xf32> to vector<8x286xf32>
    %c24_67 = arith.constant 24 : index
    %c0_68 = arith.constant 0 : index
    %45 = vector.load %arg4[%c24_67, %c0_68] : memref<72x286xf32, #tpu.memory_space<vmem>>, vector<8x286xf32>
    tpu.vector_store %arg4[%c24_67, %c0_68], %44 {strides = array<i32>} : memref<72x286xf32, #tpu.memory_space<vmem>>, vector<8x286xf32>,
    %c1_69 = arith.constant 1 : index
    %c0_70 = arith.constant 0 : index
    %c0_71 = arith.constant 0 : index
    %c19_72 = arith.constant 19 : index
    %46 = vector.load %arg1[%c1_69, %c0_70, %c0_71, %c19_72] : memref<2x1x8x324xf32, #tpu.memory_space<vmem>>, vector<1x1x8x286xf32>
    %47 = vector.shape_cast %46 : vector<1x1x8x286xf32> to vector<8x286xf32>
    %c32_73 = arith.constant 32 : index
    %c0_74 = arith.constant 0 : index
    %48 = vector.load %arg4[%c32_73, %c0_74] : memref<72x286xf32, #tpu.memory_space<vmem>>, vector<8x286xf32>
    tpu.vector_store %arg4[%c32_73, %c0_74], %47 {strides = array<i32>} : memref<72x286xf32, #tpu.memory_space<vmem>>, vector<8x286xf32>,
    %c1_75 = arith.constant 1 : index
    %c0_76 = arith.constant 0 : index
    %c0_77 = arith.constant 0 : index
    %c20_78 = arith.constant 20 : index
    %49 = vector.load %arg1[%c1_75, %c0_76, %c0_77, %c20_78] : memref<2x1x8x324xf32, #tpu.memory_space<vmem>>, vector<1x1x8x286xf32>
    %50 = vector.shape_cast %49 : vector<1x1x8x286xf32> to vector<8x286xf32>
    %c40_79 = arith.constant 40 : index
    %c0_80 = arith.constant 0 : index
    %51 = vector.load %arg4[%c40_79, %c0_80] : memref<72x286xf32, #tpu.memory_space<vmem>>, vector<8x286xf32>
    tpu.vector_store %arg4[%c40_79, %c0_80], %50 {strides = array<i32>} : memref<72x286xf32, #tpu.memory_space<vmem>>, vector<8x286xf32>,
    %c1_81 = arith.constant 1 : index
    %c0_82 = arith.constant 0 : index
    %c0_83 = arith.constant 0 : index
    %c36_84 = arith.constant 36 : index
    %52 = vector.load %arg1[%c1_81, %c0_82, %c0_83, %c36_84] : memref<2x1x8x324xf32, #tpu.memory_space<vmem>>, vector<1x1x8x286xf32>
    %53 = vector.shape_cast %52 : vector<1x1x8x286xf32> to vector<8x286xf32>
    %c48_85 = arith.constant 48 : index
    %c0_86 = arith.constant 0 : index
    %54 = vector.load %arg4[%c48_85, %c0_86] : memref<72x286xf32, #tpu.memory_space<vmem>>, vector<8x286xf32>
    tpu.vector_store %arg4[%c48_85, %c0_86], %53 {strides = array<i32>} : memref<72x286xf32, #tpu.memory_space<vmem>>, vector<8x286xf32>,
    %c1_87 = arith.constant 1 : index
    %c0_88 = arith.constant 0 : index
    %c0_89 = arith.constant 0 : index
    %c37_90 = arith.constant 37 : index
    %55 = vector.load %arg1[%c1_87, %c0_88, %c0_89, %c37_90] : memref<2x1x8x324xf32, #tpu.memory_space<vmem>>, vector<1x1x8x286xf32>
    %56 = vector.shape_cast %55 : vector<1x1x8x286xf32> to vector<8x286xf32>
    %c56_91 = arith.constant 56 : index
    %c0_92 = arith.constant 0 : index
    %57 = vector.load %arg4[%c56_91, %c0_92] : memref<72x286xf32, #tpu.memory_space<vmem>>, vector<8x286xf32>
    tpu.vector_store %arg4[%c56_91, %c0_92], %56 {strides = array<i32>} : memref<72x286xf32, #tpu.memory_space<vmem>>, vector<8x286xf32>,
    %c1_93 = arith.constant 1 : index
    %c0_94 = arith.constant 0 : index
    %c0_95 = arith.constant 0 : index
    %c38_96 = arith.constant 38 : index
    %58 = vector.load %arg1[%c1_93, %c0_94, %c0_95, %c38_96] : memref<2x1x8x324xf32, #tpu.memory_space<vmem>>, vector<1x1x8x286xf32>
    %59 = vector.shape_cast %58 : vector<1x1x8x286xf32> to vector<8x286xf32>
    %c64_97 = arith.constant 64 : index
    %c0_98 = arith.constant 0 : index
    %60 = vector.load %arg4[%c64_97, %c0_98] : memref<72x286xf32, #tpu.memory_space<vmem>>, vector<8x286xf32>
    tpu.vector_store %arg4[%c64_97, %c0_98], %59 {strides = array<i32>} : memref<72x286xf32, #tpu.memory_space<vmem>>, vector<8x286xf32>,
    %c1_99 = arith.constant 1 : index
    %c0_100 = arith.constant 0 : index
    %c0_101 = arith.constant 0 : index
    %61 = vector.load %arg2[%c1_99, %c0_100, %c0_101] : memref<2x3x72xf32, #tpu.memory_space<vmem>>, vector<1x3x72xf32>
    %62 = vector.shape_cast %61 : vector<1x3x72xf32> to vector<3x72xf32>
    %c0_102 = arith.constant 0 : index
    %c0_103 = arith.constant 0 : index
    %63 = vector.load %arg4[%c0_102, %c0_103] : memref<72x286xf32, #tpu.memory_space<vmem>>, vector<72x286xf32>
    %cst_104 = arith.constant dense<0.000000e+00> : vector<3x286xf32>
    %64 = tpu.matmul %62, %63, %cst_104 {dimension_numbers = #tpu.dot_dimension_numbers<[1], [0], [0], [1], [0, 0, 1, 1], [], []>} : vector<3x72xf32>, vector<72x286xf32>, vector<3x286xf32> -> vector<3x286xf32>
    %c1_105 = arith.constant 1 : index
    %c0_106 = arith.constant 0 : index
    %c0_107 = arith.constant 0 : index
    %65 = vector.load %arg3[%c1_105, %c0_106, %c0_107] : memref<2x3x286xf32, #tpu.memory_space<vmem>>, vector<1x3x286xf32>
    %66 = vector.shape_cast %65 : vector<1x3x286xf32> to vector<3x286xf32>
    %67 = vector.shape_cast %64 : vector<3x286xf32> to vector<1x3x286xf32>
    tpu.vector_store %arg3[%c1_105, %c0_106, %c0_107], %67 {strides = array<i32>} : memref<2x3x286xf32, #tpu.memory_space<vmem>>, vector<1x3x286xf32>,
    return
  }
  func.func @transform_0(%arg0: i32) -> (i32, i32, i32, i32) {
    %c0_i32 = arith.constant 0 : i32
    %c0_i32_0 = arith.constant 0 : i32
    %c0_i32_1 = arith.constant 0 : i32
    %c0_i32_2 = arith.constant 0 : i32
    return %arg0, %c0_i32, %c0_i32_0, %c0_i32_1 : i32, i32, i32, i32
  }
  func.func @transform_1(%arg0: i32) -> (i32, i32, i32) {
    %c0_i32 = arith.constant 0 : i32
    %c0_i32_0 = arith.constant 0 : i32
    %c0_i32_1 = arith.constant 0 : i32
    return %arg0, %c0_i32, %c0_i32_0 : i32, i32, i32
  }
  func.func @transform_2(%arg0: i32) -> (i32, i32, i32) {
    %c0_i32 = arith.constant 0 : i32
    %c0_i32_0 = arith.constant 0 : i32
    %c0_i32_1 = arith.constant 0 : i32
    return %arg0, %c0_i32, %c0_i32_0 : i32, i32, i32
  }
}

</mosaic_0001>

<bundles_post_ra>
// kernel: tpu_custom_call.1
= control target key start
LH: loop header
LB: loop body
LE: loop exit
PB: predicated region body
PF: predicated region fallthrough
CT: control target
= control target key end

     0   :  { %7 = vsyncpa [#allocation4], 0  ;;  %s621_s12 = smov [#allocation3]   ;;  %s622_s14 = smov 384   ;;  %s839_s0 = inlined_call_operand.hbm [shape: f32[2,1,8,324], index: 0, kind: input, shape index: {}]   ;;  %s840_s1 = inlined_call_operand.vmem [shape: f32[2,3,72], index: 1, kind: input, shape index: {}]   ;;  %s841_s2 = inlined_call_operand.vmem [shape: f32[2,3,286], index: 2, kind: output, shape index: {}]  }
   0x1   :  { %s12_s11 = sshll.u32 %s839_s0, 4  ;;  %s14_s13 = sshll.u32 %s621_s12, 4  ;;  %s13_s11 = int_to_ptr.hbm [resolvable:$true] %s12_s11  ;;  %s15_s13 = int_to_ptr.vmem [resolvable:$true] %s14_s13 }
   0x2   :  { %s623_s15 = smov 24  }
   0x3   :  { %20 = dma.hbm_to_vmem [thread:$0]  %s13_s11, 768, %s15_s13, [#allocation4], %s622_s14, %s622_s14, %s623_s15  }
   0x4   :  { %619 = dma.done.wait [#allocation4], 768  }
   0x5   :  { %620 = vsyncadd [#allocation4], 4294966528  ;;  %v650_v0 = vld [vmem:[#allocation3] sm:$0xff]  ;;  %s624_s16 = smov 90   ;;  %s625_s17 = smov 91   ;;  %v656_v1 = vld [vmem:[#allocation3 + $0x18] sm:$0xff] }
   0x6   :  { %187 = vrot.lane.b32.xlu0 %v650_v0, %s624_s16  ;;  %166 = vrot.lane.b32.xlu1 %v650_v0, %s625_s17  ;;  %s626_s0 = smov 92   ;;  %v660_v2 = vld [vmem:[#allocation3 + $0x20] sm:$0xff]  ;;  %v662_v3 = vld [vmem:[#allocation3 + $0x8] sm:$0xff]  ;;  %v183_v4 = vld [vmem:[#allocation3 + $0x10] sm:$0xff]  ;;  %s627_s18 = smov 108   ;;  %vm32_vm0 = vcmask 244736  }
   0x7   :  { %145 = vrot.lane.b32.xlu2 %v650_v0, %s626_s0  ;;  %s628_s19 = smov 109   ;;  %s629_s20 = smov 110   ;;  %v701_v5 = vld [vmem:[#allocation3 + $0x28] sm:$0xff]  ;;  %33 = vst.msk [vmem:[#allocation2 + $0x10] sm:$0xff] %vm32_vm0, %v183_v4  ;;  %vm193_vm1 = vcmask 736256   ;;  %vm172_vm2 = vcmask 744448  }
   0x8   :  { %s630_s21 = smov 126   ;;  %s631_s22 = smov 127   ;;  %vm151_vm3 = vcmask 752640   ;;  %vm130_vm4 = vcmask 883712   ;;  %vm109_vm5 = vcmask 891904   ;;  %vm88_vm6 = vcmask 900096  }
   0x9   :  { %vm67_vm7 = vcmask 1031168   ;;  %vm46_vm8 = vcmask 1039360   ;;  %vm230_vm9 = vcmask 588800   ;;  %vm297_vm10 = vcmask 1043456  }
   0xa   :  { %vm301_vm11 = vcmask 239616  }
   0xe   :  { %189 = vrot.lane.b32.xlu0 %v662_v3, %s624_s16  ;;  %168 = vrot.lane.b32.xlu1 %v662_v3, %s625_s17 }
   0xf   :  { %147 = vrot.lane.b32.xlu2 %v662_v3, %s626_s0 }
  0x16   :  { %191 = vrot.lane.b32.xlu0 %v183_v4, %s624_s16  ;;  %124 = vrot.lane.b32.xlu1 %v650_v0, %s627_s18 }
  0x17   :  { %126 = vrot.lane.b32.xlu2 %v662_v3, %s627_s18 }
  0x1e   :  { %170 = vrot.lane.b32.xlu0 %v183_v4, %s625_s17  ;;  %103 = vrot.lane.b32.xlu1 %v650_v0, %s628_s19 }
  0x1f   :  { %105 = vrot.lane.b32.xlu2 %v662_v3, %s628_s19 }
  0x26   :  { %149 = vrot.lane.b32.xlu0 %v183_v4, %s626_s0  ;;  %456 = vrot.lane.b32.xlu1 %v656_v1, %s624_s16 }
  0x27   :  { %458 = vrot.lane.b32.xlu2 %v660_v2, %s624_s16 }
  0x2e   :  { %84 = vrot.lane.b32.xlu1 %v662_v3, %s629_s20  ;;  %82 = vrot.lane.b32.xlu0 %v650_v0, %s629_s20 }
  0x2f   :  { %128 = vrot.lane.b32.xlu2 %v183_v4, %s627_s18 }
  0x36   :  { %438 = vrot.lane.b32.xlu1 %v660_v2, %s625_s17  ;;  %436 = vrot.lane.b32.xlu0 %v656_v1, %s625_s17 }
  0x37   :  { %61 = vrot.lane.b32.xlu2 %v650_v0, %s630_s21 }
  0x3e   :  { %107 = vrot.lane.b32.xlu1 %v183_v4, %s628_s19  ;;  %63 = vrot.lane.b32.xlu0 %v662_v3, %s630_s21 }
  0x3f   :  { %416 = vrot.lane.b32.xlu2 %v656_v1, %s626_s0 }
  0x46   :  { %460 = vrot.lane.b32.xlu1 %v701_v5, %s624_s16  ;;  %418 = vrot.lane.b32.xlu0 %v660_v2, %s626_s0 }
  0x47   :  { %40 = vrot.lane.b32.xlu2 %v650_v0, %s631_s22 }
  0x4e   :  { %86 = vrot.lane.b32.xlu1 %v183_v4, %s629_s20  ;;  %42 = vrot.lane.b32.xlu0 %v662_v3, %s631_s22 }
  0x4f   :  { %396 = vrot.lane.b32.xlu2 %v656_v1, %s627_s18 }
  0x56   :  { %440 = vrot.lane.b32.xlu1 %v701_v5, %s625_s17  ;;  %398 = vrot.lane.b32.xlu0 %v660_v2, %s627_s18 }
  0x57   :  { %65 = vrot.lane.b32.xlu2 %v183_v4, %s630_s21 }
  0x5e   :  { %378 = vrot.lane.b32.xlu1 %v660_v2, %s628_s19  ;;  %376 = vrot.lane.b32.xlu0 %v656_v1, %s628_s19 }
  0x5f   :  { %420 = vrot.lane.b32.xlu2 %v701_v5, %s626_s0 }
  0x61   :  { %v146_v6 = vpop.permute.xlu2 %145 }
  0x66   :  { %356 = vrot.lane.b32.xlu1 %v656_v1, %s629_s20  ;;  %44 = vrot.lane.b32.xlu0 %v183_v4, %s631_s22 }
  0x67   :  { %358 = vrot.lane.b32.xlu2 %v660_v2, %s629_s20 }
  0x69   :  { %v148_v7 = vpop.permute.xlu2 %147 }
  0x6a   :  { %v152_v17 = vsel %vm151_vm3, %v146_v6, %v148_v7 }
  0x6e   :  { %336 = vrot.lane.b32.xlu1 %v656_v1, %s630_s21  ;;  %400 = vrot.lane.b32.xlu0 %v701_v5, %s627_s18 }
  0x6f   :  { %338 = vrot.lane.b32.xlu2 %v660_v2, %s630_s21 }
  0x71   :  { %v127_v8 = vpop.permute.xlu2 %126 }
  0x76   :  { %316 = vrot.lane.b32.xlu1 %v656_v1, %s631_s22  ;;  %380 = vrot.lane.b32.xlu0 %v701_v5, %s628_s19 }
  0x77   :  { %318 = vrot.lane.b32.xlu2 %v660_v2, %s631_s22 }
  0x78   :  { %v188_v9 = vpop.permute.xlu0 %187  ;;  %v167_v10 = vpop.permute.xlu1 %166 }
  0x79   :  { %v743_v11 = vpop.permute.xlu2 %105 }
  0x7e   :  { %340 = vrot.lane.b32.xlu1 %v701_v5, %s630_s21  ;;  %360 = vrot.lane.b32.xlu0 %v701_v5, %s629_s20 }
  0x7f   :  { %320 = vrot.lane.b32.xlu2 %v701_v5, %s631_s22 }
  0x80   :  { %v190_v12 = vpop.permute.xlu0 %189  ;;  %v169_v13 = vpop.permute.xlu1 %168 }
  0x81   :  { %v194_v14 = vsel %vm193_vm1, %v188_v9, %v190_v12  ;;  %v752_v15 = vpop.permute.xlu2 %458  ;;  %v173_v16 = vsel %vm172_vm2, %v167_v10, %v169_v13 }
  0x82   :  { %241 = vmatpush.msra.mxu0 %v194_v14 }
  0x84   :  { %242 = vmatpush.msra.mxu0 %v173_v16 }
  0x86   :  { %243 = vmatpush.msra.mxu0 %v152_v17 }
  0x88   :  { %v192_v18 = vpop.permute.xlu0 %191  ;;  %v125_v19 = vpop.permute.xlu1 %124 }
  0x89   :  { %v195_v20 = vsel %vm193_vm1, %v190_v12, %v192_v18  ;;  %201 = vst.msk [vmem:[#allocation2 + $0xd0] sm:$0xff] %vm32_vm0, %v192_v18  ;;  %v131_v21 = vsel %vm130_vm4, %v125_v19, %v127_v8  ;;  %v129_v22 = vpop.permute.xlu2 %128 }
  0x8a   :  { %138 = vst.msk [vmem:[#allocation2 + $0x88] sm:$0xff] %vm32_vm0, %v129_v22  ;;  %261 = vmatpush.msra.mxu1 %v195_v20  ;;  %244 = vmatpush.msra.mxu0 %v131_v21  ;;  %v132_v35 = vsel %vm130_vm4, %v127_v8, %v129_v22  ;;  %v205_v21 = vld [vmem:[#allocation2 + $0x10] sm:$0xff] }
  0x8b   :  { %309 = vst.msk [vmem:[#allocation2 + $0x10] sm:$0xff] %vm32_vm0, %v701_v5 }
  0x90   :  { %v171_v23 = vpop.permute.xlu0 %170  ;;  %v104_v24 = vpop.permute.xlu1 %103  ;;  %v229_v25 = vld [vmem:[#allocation2 + $0xd0] sm:$0xff] }
  0x91   :  { %v174_v26 = vsel %vm172_vm2, %v169_v13, %v171_v23  ;;  %180 = vst.msk [vmem:[#allocation2 + $0xb8] sm:$0xff] %vm32_vm0, %v171_v23  ;;  %v110_v27 = vsel %vm109_vm5, %v104_v24, %v743_v11  ;;  %v62_v28 = vpop.permute.xlu2 %61  ;;  %281 = vmatpush.msra.mxu2 %v229_v25  ;;  %v220_v39 = vld [vmem:[#allocation2 + $0x88] sm:$0xff] }
  0x92   :  { %262 = vmatpush.msra.mxu1 %v174_v26  ;;  %245 = vmatpush.msra.mxu0 %v110_v27 }
  0x98   :  { %v150_v29 = vpop.permute.xlu0 %149  ;;  %v457_v30 = vpop.permute.xlu1 %456  ;;  %v226_v31 = vld [vmem:[#allocation2 + $0xb8] sm:$0xff] }
  0x99   :  { %v153_v32 = vsel %vm151_vm3, %v148_v7, %v150_v29  ;;  %159 = vst.msk [vmem:[#allocation2 + $0xa0] sm:$0xff] %vm32_vm0, %v150_v29  ;;  %v462_v33 = vsel %vm193_vm1, %v457_v30, %v752_v15  ;;  %v417_v34 = vpop.permute.xlu2 %416  ;;  %282 = vmatpush.msra.mxu2 %v226_v31 }
  0x9a   :  { %263 = vmatpush.msra.mxu1 %v153_v32  ;;  %509 = vmatpush.msra.mxu3 %v462_v33 }
  0x9c   :  { %264 = vmatpush.msra.mxu1 %v132_v35 }
  0xa0   :  { %v85_v36 = vpop.permute.xlu1 %84  ;;  %v83_v37 = vpop.permute.xlu0 %82  ;;  %v223_v38 = vld [vmem:[#allocation2 + $0xa0] sm:$0xff] }
  0xa1   :  { %v89_v40 = vsel %vm88_vm6, %v83_v37, %v85_v36  ;;  %v41_v41 = vpop.permute.xlu2 %40  ;;  %283 = vmatpush.msra.mxu2 %v223_v38 }
  0xa2   :  { %246 = vmatpush.msra.mxu0 %v89_v40 }
  0xa3   :  { %284 = vmatpush.msra.mxu2 %v220_v39 }
  0xa8   :  { %v439_v42 = vpop.permute.xlu1 %438  ;;  %v437_v43 = vpop.permute.xlu0 %436 }
  0xa9   :  { %v442_v44 = vsel %vm172_vm2, %v437_v43, %v439_v42  ;;  %v397_v45 = vpop.permute.xlu2 %396 }
  0xaa   :  { %510 = vmatpush.msra.mxu3 %v442_v44 }
  0xb0   :  { %v108_v46 = vpop.permute.xlu1 %107  ;;  %v64_v47 = vpop.permute.xlu0 %63 }
  0xb1   :  { %v111_v48 = vsel %vm109_vm5, %v743_v11, %v108_v46  ;;  %117 = vst.msk [vmem:[#allocation2 + $0x70] sm:$0xff] %vm32_vm0, %v108_v46  ;;  %v68_v49 = vsel %vm67_vm7, %v62_v28, %v64_v47  ;;  %v66_v50 = vpop.permute.xlu2 %65 }
  0xb2   :  { %75 = vst.msk [vmem:[#allocation2 + $0x40] sm:$0xff] %vm32_vm0, %v66_v50  ;;  %247 = vmatpush.msra.mxu0 %v68_v49  ;;  %265 = vmatpush.msra.mxu1 %v111_v48  ;;  %v69_v63 = vsel %vm67_vm7, %v64_v47, %v66_v50 }
  0xb8   :  { %v461_v51 = vpop.permute.xlu1 %460  ;;  %v419_v52 = vpop.permute.xlu0 %418  ;;  %v217_v53 = vld [vmem:[#allocation2 + $0x70] sm:$0xff] }
  0xb9   :  { %v463_v54 = vsel %vm193_vm1, %v752_v15, %v461_v51  ;;  %469 = vst.msk [vmem:[#allocation2 + $0xd0] sm:$0xff] %vm32_vm0, %v461_v51  ;;  %v422_v55 = vsel %vm151_vm3, %v417_v34, %v419_v52  ;;  %v421_v56 = vpop.permute.xlu2 %420  ;;  %285 = vmatpush.msra.mxu2 %v217_v53  ;;  %v211_v8 = vld [vmem:[#allocation2 + $0x40] sm:$0xff] }
  0xba   :  { %v423_v57 = vsel %vm151_vm3, %v419_v52, %v421_v56  ;;  %511 = vmatpush.msra.mxu3 %v422_v55  ;;  %429 = vst.msk [vmem:[#allocation2 + $0xa0] sm:$0xff] %vm32_vm0, %v421_v56  ;;  %v202_v15 = vld [vmem:[%s840_s1] sm:$0x7]  ;;  %v578_v34 = vld [vmem:[%s840_s1 + $0x4] sm:$0x7] }
  0xc0   :  { %v87_v58 = vpop.permute.xlu1 %86  ;;  %v43_v59 = vpop.permute.xlu0 %42  ;;  %v498_v23 = vld [vmem:[#allocation2 + $0xd0] sm:$0xff] }
  0xc1   :  { %v90_v60 = vsel %vm88_vm6, %v85_v36, %v87_v58  ;;  %96 = vst.msk [vmem:[#allocation2 + $0x58] sm:$0xff] %vm32_vm0, %v87_v58  ;;  %v47_v61 = vsel %vm46_vm8, %v41_v41, %v43_v59  ;;  %v785_v62 = vpop.permute.xlu2 %358  ;;  %v492_v28 = vld [vmem:[#allocation2 + $0xa0] sm:$0xff] }
  0xc2   :  { %248 = vmatpush.msra.mxu0 %v47_v61  ;;  %266 = vmatpush.msra.mxu1 %v90_v60 }
  0xc4   :  { %249 = vmatpush.msra.mxu0 %v650_v0  ;;  %267 = vmatpush.msra.mxu1 %v69_v63 }
  0xc5   :  { %575 = vmatmul.msk.f32.vlgmr.msra.gmra.mxu0 %vm230_vm9, %v202_v15 }
  0xc6   :  { %529 = vmatpush.msrb.mxu0 %v463_v54 }
  0xc8   :  { %v441_v4 = vpop.permute.xlu1 %440  ;;  %v399_v6 = vpop.permute.xlu0 %398  ;;  %v214_v7 = vld [vmem:[#allocation2 + $0x58] sm:$0xff] }
  0xc9   :  { %v443_v9 = vsel %vm172_vm2, %v439_v42, %v441_v4  ;;  %449 = vst.msk [vmem:[#allocation2 + $0xb8] sm:$0xff] %vm32_vm0, %v441_v4  ;;  %v402_v10 = vsel %vm130_vm4, %v397_v45, %v399_v6  ;;  %286 = vmatpush.msra.mxu2 %v214_v7  ;;  %v339_v11 = vpop.permute.xlu2 %338  ;;  %v474_v42 = vld [vmem:[#allocation2 + $0x10] sm:$0xff] }
  0xca   :  { %512 = vmatpush.msra.mxu3 %v402_v10  ;;  %530 = vmatpush.msrb.mxu0 %v443_v9 }
  0xcb   :  { %287 = vmatpush.msra.mxu2 %v211_v8 }
  0xcc   :  { %531 = vmatpush.msrb.mxu0 %v423_v57 }
  0xd0   :  { %v379_v12 = vpop.permute.xlu1 %378  ;;  %v377_v0 = vpop.permute.xlu0 %376  ;;  %v495_v24 = vld [vmem:[#allocation2 + $0xb8] sm:$0xff] }
  0xd1   :  { %v382_v13 = vsel %vm109_vm5, %v377_v0, %v379_v12  ;;  %v319_v14 = vpop.permute.xlu2 %318 }
  0xd2   :  { %513 = vmatpush.msra.mxu3 %v382_v13 }
  0xd8   :  { %v357_v16 = vpop.permute.xlu1 %356  ;;  %v45_v17 = vpop.permute.xlu0 %44 }
  0xd9   :  { %v362_v18 = vsel %vm88_vm6, %v357_v16, %v785_v62  ;;  %v48_v19 = vsel %vm46_vm8, %v43_v59, %v45_v17  ;;  %54 = vst.msk [vmem:[#allocation2 + $0x28] sm:$0xff] %vm32_vm0, %v45_v17  ;;  %v321_v20 = vpop.permute.xlu2 %320 }
  0xda   :  { %268 = vmatpush.msra.mxu1 %v48_v19  ;;  %514 = vmatpush.msra.mxu3 %v362_v18  ;;  %v323_v22 = vsel %vm46_vm8, %v319_v14, %v321_v20 }
  0xdc   :  { %269 = vmatpush.msra.mxu1 %v662_v3 }
  0xdd   :  { %576 = vmatmul.msk.f32.vlgmr.msra.gmra.mxu1 %vm230_vm9, %v202_v15 }
  0xde   :  { %549 = vmatpush.msrb.mxu1 %v498_v23 }
  0xe0   :  { %550 = vmatpush.msrb.mxu1 %v495_v24  ;;  %v337_v25 = vpop.permute.xlu1 %336  ;;  %v401_v26 = vpop.permute.xlu0 %400  ;;  %v208_v27 = vld [vmem:[#allocation2 + $0x28] sm:$0xff] }
  0xe1   :  { %v342_v29 = vsel %vm67_vm7, %v337_v25, %v339_v11  ;;  %v403_v30 = vsel %vm130_vm4, %v399_v6, %v401_v26  ;;  %409 = vst.msk [vmem:[#allocation2 + $0x88] sm:$0xff] %vm32_vm0, %v401_v26  ;;  %288 = vmatpush.msra.mxu2 %v208_v27 }
  0xe2   :  { %551 = vmatpush.msrb.mxu1 %v492_v28  ;;  %532 = vmatpush.msrb.mxu0 %v403_v30  ;;  %329 = vst.msk [vmem:[#allocation2 + $0x28] sm:$0xff] %vm32_vm0, %v321_v20 }
  0xe3   :  { %515 = vmatpush.msra.mxu3 %v342_v29  ;;  %289 = vmatpush.msra.mxu2 %v205_v21 }
  0xe4   :  { %577 = vmatmul.msk.f32.vlgmr.msra.gmra.mxu2 %vm230_vm9, %v202_v15 }
  0xe8   :  { %v317_v3 = vpop.permute.xlu1 %316  ;;  %v381_v5 = vpop.permute.xlu0 %380  ;;  %v489_v31 = vld [vmem:[#allocation2 + $0x88] sm:$0xff] }
  0xe9   :  { %v322_v32 = vsel %vm46_vm8, %v317_v3, %v319_v14  ;;  %v383_v33 = vsel %vm109_vm5, %v379_v12, %v381_v5  ;;  %389 = vst.msk [vmem:[#allocation2 + $0x70] sm:$0xff] %vm32_vm0, %v381_v5  ;;  %552 = vmatpush.msrb.mxu1 %v489_v31  ;;  %v477_v41 = vld [vmem:[#allocation2 + $0x28] sm:$0xff] }
  0xea   :  { %533 = vmatpush.msrb.mxu0 %v383_v33  ;;  %516 = vmatpush.msra.mxu3 %v322_v32 }
  0xec   :  { %517 = vmatpush.msra.mxu3 %v656_v1 }
  0xed   :  { %579 = vmatmul.msk.f32.vlgmr.msra.gmra.mxu3 %vm230_vm9, %v578_v34 }
  0xf0   :  { %v341_v35 = vpop.permute.xlu1 %340  ;;  %v361_v36 = vpop.permute.xlu0 %360  ;;  %v486_v37 = vld [vmem:[#allocation2 + $0x70] sm:$0xff] }
  0xf1   :  { %v343_v38 = vsel %vm67_vm7, %v339_v11, %v341_v35  ;;  %349 = vst.msk [vmem:[#allocation2 + $0x40] sm:$0xff] %vm32_vm0, %v341_v35  ;;  %v363_v39 = vsel %vm88_vm6, %v785_v62, %v361_v36  ;;  %553 = vmatpush.msrb.mxu1 %v486_v37 }
  0xf2   :  { %534 = vmatpush.msrb.mxu0 %v363_v39  ;;  %369 = vst.msk [vmem:[#allocation2 + $0x58] sm:$0xff] %vm32_vm0, %v361_v36 }
  0xf4   :  { %535 = vmatpush.msrb.mxu0 %v343_v38 }
  0xf6   :  { %536 = vmatpush.msrb.mxu0 %v323_v22 }
  0xf8   :  { %537 = vmatpush.msrb.mxu0 %v660_v2  ;;  %v480_v40 = vld [vmem:[#allocation2 + $0x40] sm:$0xff] }
  0xf9   :  { %580 = vmatmul.msk.f32.vlgmr.msrb.gmra.mxu0 %vm230_vm9, %v578_v34  ;;  %v483_v1 = vld [vmem:[#allocation2 + $0x58] sm:$0xff] }
  0xfa   :  { %554 = vmatpush.msrb.mxu1 %v483_v1 }
  0xfc   :  { %555 = vmatpush.msrb.mxu1 %v480_v40 }
  0xfe   :  { %556 = vmatpush.msrb.mxu1 %v477_v41 }
 0x100   :  { %557 = vmatpush.msrb.mxu1 %v474_v42 }
 0x101   :  { %581 = vmatmul.msk.f32.vlgmr.msrb.gmra.mxu1 %vm230_vm9, %v578_v34 }
 0x142   :  { %v251_v44 = vpop.f32.mrf.mxu0 }
 0x15a   :  { %v271_v43 = vpop.f32.mrf.mxu1 }
 0x15b   :  { %v296_v45 = vrot.slane %v271_v43, 4 }
 0x15d   :  { %v298_v46 = vsel %vm297_vm10, %v251_v44, %v296_v45 }
 0x15e   :  { %300 = vst [vmem:[%s841_s2] sm:$0x77] %v298_v46 }
 0x167   :  { %v291_v2 = vpop.f32.mrf.mxu2 }
 0x168   :  { %302 = vst.msk [vmem:[%s841_s2 + $0x8] sm:$0x7] %vm301_vm11, %v291_v2 }
 0x170   :  { %v519_v48 = vpop.f32.mrf.mxu3 }
 0x176   :  { %v539_v47 = vpop.f32.mrf.mxu0 }
 0x177   :  { %v564_v49 = vrot.slane %v539_v47, 4 }
 0x179   :  { %v565_v50 = vsel %vm297_vm10, %v519_v48, %v564_v49 }
 0x17a   :  { %582 = vst [vmem:[%s841_s2 + $0xc] sm:$0x77] %v565_v50 }
 0x17e   :  { %v559_v51 = vpop.f32.mrf.mxu1 }
 0x17f   :  { %583 = vst.msk [vmem:[%s841_s2 + $0x14] sm:$0x7] %vm301_vm11, %v559_v51 }
 0x180   :  { %574 = vsyncpa [#allocation4], 1 }

</bundles_post_ra>
